<compile_context>
chip_gen: v7x
topology: tpu7x:2x2x1
jax: 0.10.0
libtpu: 0.0.40
codegen_flags: <defaults>
</compile_context>

<pallas_src>
import functools

import jax
import jax.numpy as jnp
from jax.experimental import pallas as pl
from jax.experimental.pallas import tpu as pltpu


# ----------------------------- Pallas kernel ------------------------------ #
def encoder_layer_kernel(x0_ref, bias_ref,
                         wq_ref, wk_ref, wv_ref, wo_ref, bo_ref,
                         g1_ref, be1_ref, g2_ref, be2_ref,
                         w1_ref, bf1_ref, w2_ref, bf2_ref,
                         out_ref, *, heads, head_dim, embed):
    # Layer 0: seed the resident activation block with the embeddings.
    @pl.when(pl.program_id(0) == 0)
    def _():
        out_ref[...] = x0_ref[...]

    x = out_ref[...]                          # (NS, E) activation carried in VMEM
    ns = x.shape[0]
    scale = 1.0 / (float(embed) ** 0.5)       # reference scales by sqrt(embed_size)

    # ---- multi-head self-attention (shared per-head projections) ----
    xb = jnp.broadcast_to(x[None], (heads, ns, embed))          # (h, NS, E)
    q = jnp.einsum('hse,hed->hsd', xb, wq_ref[0],
                   preferred_element_type=jnp.float32)          # (h, NS, hd)
    k = jnp.einsum('hse,hed->hsd', xb, wk_ref[0],
                   preferred_element_type=jnp.float32)
    v = jnp.einsum('hse,hed->hsd', xb, wv_ref[0],
                   preferred_element_type=jnp.float32)

    energy = jnp.einsum('hqd,hkd->hqk', q, k,
                        preferred_element_type=jnp.float32)     # (h, NS, NS)
    # additive mask bias: 0 where attending is allowed, -1e20 where key is
    # padded or belongs to another (folded) batch element
    s = (energy + bias_ref[...][None]) * scale
    e = jnp.exp(s - jnp.max(s, axis=-1, keepdims=True))
    attn = e * pl.reciprocal(jnp.sum(e, axis=-1, keepdims=True), approx=True)

    ho = jnp.einsum('hqk,hkd->hqd', attn, v,
                    preferred_element_type=jnp.float32)         # (h, NS, hd)
    # concat-heads @ Wo  ==  sum_h  head_out_h @ Wo[h]
    proj = jnp.einsum('hsd,hde->hse', ho, wo_ref[0],
                      preferred_element_type=jnp.float32)       # (h, NS, E)
    attn_out = jnp.sum(proj, axis=0) + bo_ref[0]                # (NS, E)

    # ---- residual + LayerNorm1 (dropout = identity at inference) ----
    xr = attn_out + x
    mu = jnp.mean(xr, axis=-1, keepdims=True)
    var = jnp.mean((xr - mu) ** 2, axis=-1, keepdims=True)
    xn = (xr - mu) * jax.lax.rsqrt(var + 1e-5) * g1_ref[0] + be1_ref[0]

    # ---- feed-forward (Linear -> ReLU -> Linear) ----
    h1 = jnp.maximum(
        jnp.dot(xn, w1_ref[0], preferred_element_type=jnp.float32) + bf1_ref[0],
        0.0)
    ff = jnp.dot(h1, w2_ref[0], preferred_element_type=jnp.float32) + bf2_ref[0]

    # ---- residual + LayerNorm2 ----
    yr = ff + xn
    mu2 = jnp.mean(yr, axis=-1, keepdims=True)
    var2 = jnp.mean((yr - mu2) ** 2, axis=-1, keepdims=True)
    out_ref[...] = ((yr - mu2) * jax.lax.rsqrt(var2 + 1e-5)
                    * g2_ref[0] + be2_ref[0]).astype(out_ref.dtype)


def encoder_stack(x, bias, sp, *, heads):
    """x: (N*seq, embed) f32, bias: (N*seq, N*seq) f32, sp: stacked layer params."""
    ns, embed = x.shape
    num_layers = sp["w1"].shape[0]
    kernel = functools.partial(encoder_layer_kernel, heads=heads,
                               head_dim=embed // heads, embed=embed)

    def const_spec(arr):            # resident across all layers
        nd = arr.ndim
        return pl.BlockSpec(arr.shape, lambda l, _nd=nd: (0,) * _nd)

    def layer_spec(arr):            # streamed: one layer slice per grid step
        nd = arr.ndim
        return pl.BlockSpec((1,) + arr.shape[1:],
                            lambda l, _nd=nd: (l,) + (0,) * (_nd - 1))

    weights = (sp["wq"], sp["wk"], sp["wv"], sp["wo"], sp["bo"],
               sp["g1"], sp["be1"], sp["g2"], sp["be2"],
               sp["w1"], sp["bf1"], sp["w2"], sp["bf2"])

    return pl.pallas_call(
        kernel,
        out_shape=jax.ShapeDtypeStruct((ns, embed), x.dtype),
        grid=(num_layers,),
        in_specs=[const_spec(x), const_spec(bias)] + [layer_spec(w) for w in weights],
        out_specs=pl.BlockSpec((ns, embed), lambda l: (0, 0)),
        compiler_params=pltpu.CompilerParams(
            dimension_semantics=("arbitrary",)),   # layer axis is a carried loop
    )(x, bias, *weights)


# ----------------------------- parameter init ----------------------------- #
def init_params(key, src_vocab_size, embed_size, num_layers, heads,
                forward_expansion, max_length):
    hd = embed_size // heads
    hidden = forward_expansion * embed_size
    L = num_layers
    k = jax.random.split(key, 10)

    # shared per-head projections (Linear(head_dim, head_dim, bias=False)),
    # stored pre-transposed as (in_features, out_features)
    wq = 0.1 * jax.random.normal(k[2], (L, hd, hd), jnp.float32)
    wk = 0.1 * jax.random.normal(k[3], (L, hd, hd), jnp.float32)
    wv = 0.1 * jax.random.normal(k[4], (L, hd, hd), jnp.float32)
    wo = 0.1 * jax.random.normal(k[5], (L, embed_size, embed_size), jnp.float32)
    bo = 0.01 * jax.random.normal(k[6], (L, 1, embed_size), jnp.float32)
    w1 = 0.1 * jax.random.normal(k[7], (L, embed_size, hidden), jnp.float32)
    bf1 = 0.01 * jax.random.normal(k[8], (L, 1, hidden), jnp.float32)
    w2 = 0.1 * jax.random.normal(k[9], (L, hidden, embed_size), jnp.float32)
    bf2 = jnp.zeros((L, 1, embed_size), jnp.float32)

    def expand_per_head(w):
        # (L, hd, hd) shared weight -> (L, heads, embed, hd); head h's matrix is
        # zero except rows [h*hd:(h+1)*hd] = w, so  x @ W_h == x[:, h-slice] @ w
        out = jnp.zeros((L, heads, embed_size, hd), jnp.float32)
        for h in range(heads):
            out = out.at[:, h, h * hd:(h + 1) * hd, :].set(w)
        return out

    stacked = {
        "wq": expand_per_head(wq),
        "wk": expand_per_head(wk),
        "wv": expand_per_head(wv),
        "wo": wo.reshape(L, heads, hd, embed_size),   # rows grouped by head
        "bo": bo,
        "g1": jnp.ones((L, 1, embed_size), jnp.float32),
        "be1": jnp.zeros((L, 1, embed_size), jnp.float32),
        "g2": jnp.ones((L, 1, embed_size), jnp.float32),
        "be2": jnp.zeros((L, 1, embed_size), jnp.float32),
        "w1": w1, "bf1": bf1, "w2": w2, "bf2": bf2,
    }
    return {
        "word_emb": 0.02 * jax.random.normal(k[0], (src_vocab_size, embed_size),
                                             jnp.float32),
        "pos_emb": 0.02 * jax.random.normal(k[1], (max_length, embed_size),
                                            jnp.float32),
        "stacked": stacked,
    }


# ------------------------------ encoder fwd ------------------------------- #
def encoder_forward(tokens, mask, params, heads):
    # tokens: (N, seq) int32; mask: (N, 1, 1, seq) {0,1}
    N, seq = tokens.shape
    embed = params["word_emb"].shape[1]

    we = jnp.take(params["word_emb"], tokens, axis=0)               # (N, seq, E)
    pe = jnp.take(params["pos_emb"], jnp.arange(seq, dtype=jnp.int32), axis=0)
    x = (we + pe[None, :, :]).reshape(N * seq, embed)               # fold batch
    # TODO(synk): nn.Dropout is identity at inference; training-mode dropout not implemented.

    # Additive attention-mask bias over the folded (N*seq) key axis:
    #  -1e20 for padded keys and for keys belonging to a different batch element.
    key_ok = mask.reshape(N * seq).astype(jnp.int32)
    batch_ids = jnp.repeat(jnp.arange(N, dtype=jnp.int32), seq)
    allowed = (batch_ids[:, None] == batch_ids[None, :]) & (key_ok[None, :] != 0)
    bias = jnp.where(allowed, 0.0, -1e20).astype(jnp.float32)       # (NS, NS)

    out = encoder_stack(x, bias, params["stacked"], heads=heads)
    return out.reshape(N, seq, embed)


# --------------------------------- main ------------------------------------ #
if __name__ == "__main__":
    src_vocab_size = 50
    embed_size = 32
    num_layers = 2
    heads = 4
    forward_expansion = 4
    max_length = 16
    N, seq = 2, 8

    key = jax.random.PRNGKey(0)
    pkey, tkey = jax.random.split(key)
    params = init_params(pkey, src_vocab_size, embed_size, num_layers, heads,
                         forward_expansion, max_length)

    tokens = jax.random.randint(tkey, (N, seq), 0, src_vocab_size, dtype=jnp.int32)
    # padding-style src mask: batch 0 full length, batch 1 last two positions masked
    lengths = jnp.array([seq, seq - 2])
    mask = (jnp.arange(seq)[None, :] < lengths[:, None]).astype(jnp.int32)
    mask = mask.reshape(N, 1, 1, seq)

    out = encoder_forward(tokens, mask, params, heads)
    out = jax.block_until_ready(out)
    assert out.shape == (N, seq, embed_size)
    assert bool(jnp.all(jnp.isfinite(out)))
    print("KERNEL_OK")
</pallas_src>

<mosaic_0001>
module attributes {stable_mosaic.version = 11 : i64} {
  func.func @encoder_layer_kernel(%arg0: i32, %arg1: memref<16x32xf32, #tpu.memory_space<vmem>>, %arg2: memref<16x16xf32, #tpu.memory_space<vmem>>, %arg3: memref<1x4x32x8xf32, #tpu.memory_space<vmem>>, %arg4: memref<1x4x32x8xf32, #tpu.memory_space<vmem>>, %arg5: memref<1x4x32x8xf32, #tpu.memory_space<vmem>>, %arg6: memref<1x4x8x32xf32, #tpu.memory_space<vmem>>, %arg7: memref<1x1x32xf32, #tpu.memory_space<vmem>>, %arg8: memref<1x1x32xf32, #tpu.memory_space<vmem>>, %arg9: memref<1x1x32xf32, #tpu.memory_space<vmem>>, %arg10: memref<1x1x32xf32, #tpu.memory_space<vmem>>, %arg11: memref<1x1x32xf32, #tpu.memory_space<vmem>>, %arg12: memref<1x32x128xf32, #tpu.memory_space<vmem>>, %arg13: memref<1x1x128xf32, #tpu.memory_space<vmem>>, %arg14: memref<1x128x32xf32, #tpu.memory_space<vmem>>, %arg15: memref<1x1x32xf32, #tpu.memory_space<vmem>>, %arg16: memref<16x32xf32, #tpu.memory_space<vmem>>) attributes {dimension_semantics = [#tpu.dimension_semantics<arbitrary>], iteration_bounds = array<i64: 2>, scalar_prefetch = 0 : i64, scratch_operands = 0 : i64, tpu.core_type = #tpu.core_type<tc>, window_params = [{pipeline_mode = #tpu.pipeline_mode<synchronous>, transform_indices = @transform_0, window_bounds = array<i64: 16, 32>}, {pipeline_mode = #tpu.pipeline_mode<synchronous>, transform_indices = @transform_1, window_bounds = array<i64: 16, 16>}, {transform_indices = @transform_2, window_bounds = array<i64: 1, 4, 32, 8>}, {transform_indices = @transform_3, window_bounds = array<i64: 1, 4, 32, 8>}, {transform_indices = @transform_4, window_bounds = array<i64: 1, 4, 32, 8>}, {transform_indices = @transform_5, window_bounds = array<i64: 1, 4, 8, 32>}, {transform_indices = @transform_6, window_bounds = array<i64: 1, 1, 32>}, {transform_indices = @transform_7, window_bounds = array<i64: 1, 1, 32>}, {transform_indices = @transform_8, window_bounds = array<i64: 1, 1, 32>}, {transform_indices = @transform_9, window_bounds = array<i64: 1, 1, 32>}, {transform_indices = @transform_10, window_bounds = array<i64: 1, 1, 32>}, {transform_indices = @transform_11, window_bounds = array<i64: 1, 32, 128>}, {transform_indices = @transform_12, window_bounds = array<i64: 1, 1, 128>}, {transform_indices = @transform_13, window_bounds = array<i64: 1, 128, 32>}, {transform_indices = @transform_14, window_bounds = array<i64: 1, 1, 32>}, {pipeline_mode = #tpu.pipeline_mode<synchronous>, transform_indices = @transform_15, window_bounds = array<i64: 16, 32>}]} {
    %c0_i32 = arith.constant 0 : i32
    %0 = arith.cmpi eq, %arg0, %c0_i32 : i32
    %1 = arith.extui %0 : i1 to i32
    %c0_i32_0 = arith.constant 0 : i32
    %2 = arith.cmpi ne, %1, %c0_i32_0 : i32
    scf.if %2 {
      %c0_71 = arith.constant 0 : index
      %c0_72 = arith.constant 0 : index
      %113 = vector.load %arg1[%c0_71, %c0_72] : memref<16x32xf32, #tpu.memory_space<vmem>>, vector<16x32xf32>
      %c0_73 = arith.constant 0 : index
      %c0_74 = arith.constant 0 : index
      %114 = vector.load %arg16[%c0_73, %c0_74] : memref<16x32xf32, #tpu.memory_space<vmem>>, vector<16x32xf32>
      tpu.vector_store %arg16[%c0_73, %c0_74], %113 {strides = array<i32>} : memref<16x32xf32, #tpu.memory_space<vmem>>, vector<16x32xf32>,
    } else {
    }
    %c0 = arith.constant 0 : index
    %c0_1 = arith.constant 0 : index
    %3 = vector.load %arg16[%c0, %c0_1] : memref<16x32xf32, #tpu.memory_space<vmem>>, vector<16x32xf32>
    %4 = vector.shape_cast %3 : vector<16x32xf32> to vector<1x16x32xf32>
    %5 = vector.shape_cast %4 : vector<1x16x32xf32> to vector<1x16x32xf32>
    %6 = vector.broadcast %5 : vector<1x16x32xf32> to vector<4x16x32xf32>
    %c0_2 = arith.constant 0 : index
    %c0_3 = arith.constant 0 : index
    %c0_4 = arith.constant 0 : index
    %c0_5 = arith.constant 0 : index
    %7 = vector.load %arg3[%c0_2, %c0_3, %c0_4, %c0_5] : memref<1x4x32x8xf32, #tpu.memory_space<vmem>>, vector<1x4x32x8xf32>
    %8 = vector.shape_cast %7 : vector<1x4x32x8xf32> to vector<4x32x8xf32>
    "tpu.trace_start"() <{level = 10 : i32, message = "hse,hed->hsd"}> : () -> ()
    %cst = arith.constant dense<0.000000e+00> : vector<4x16x8xf32>
    %9 = tpu.matmul %6, %8, %cst {dimension_numbers = #tpu.dot_dimension_numbers<[2], [1], [1], [2], [0, 0, 0, 1, 1, 2], [0], [0]>} : vector<4x16x32xf32>, vector<4x32x8xf32>, vector<4x16x8xf32> -> vector<4x16x8xf32>
    "tpu.trace_stop"() : () -> ()
    %c0_6 = arith.constant 0 : index
    %c0_7 = arith.constant 0 : index
    %c0_8 = arith.constant 0 : index
    %c0_9 = arith.constant 0 : index
    %10 = vector.load %arg4[%c0_6, %c0_7, %c0_8, %c0_9] : memref<1x4x32x8xf32, #tpu.memory_space<vmem>>, vector<1x4x32x8xf32>
    %11 = vector.shape_cast %10 : vector<1x4x32x8xf32> to vector<4x32x8xf32>
    "tpu.trace_start"() <{level = 10 : i32, message = "hse,hed->hsd"}> : () -> ()
    %cst_10 = arith.constant dense<0.000000e+00> : vector<4x16x8xf32>
    %12 = tpu.matmul %6, %11, %cst_10 {dimension_numbers = #tpu.dot_dimension_numbers<[2], [1], [1], [2], [0, 0, 0, 1, 1, 2], [0], [0]>} : vector<4x16x32xf32>, vector<4x32x8xf32>, vector<4x16x8xf32> -> vector<4x16x8xf32>
    "tpu.trace_stop"() : () -> ()
    %c0_11 = arith.constant 0 : index
    %c0_12 = arith.constant 0 : index
    %c0_13 = arith.constant 0 : index
    %c0_14 = arith.constant 0 : index
    %13 = vector.load %arg5[%c0_11, %c0_12, %c0_13, %c0_14] : memref<1x4x32x8xf32, #tpu.memory_space<vmem>>, vector<1x4x32x8xf32>
    %14 = vector.shape_cast %13 : vector<1x4x32x8xf32> to vector<4x32x8xf32>
    "tpu.trace_start"() <{level = 10 : i32, message = "hse,hed->hsd"}> : () -> ()
    %cst_15 = arith.constant dense<0.000000e+00> : vector<4x16x8xf32>
    %15 = tpu.matmul %6, %14, %cst_15 {dimension_numbers = #tpu.dot_dimension_numbers<[2], [1], [1], [2], [0, 0, 0, 1, 1, 2], [0], [0]>} : vector<4x16x32xf32>, vector<4x32x8xf32>, vector<4x16x8xf32> -> vector<4x16x8xf32>
    "tpu.trace_stop"() : () -> ()
    "tpu.trace_start"() <{level = 10 : i32, message = "hqd,hkd->hqk"}> : () -> ()
    %cst_16 = arith.constant dense<0.000000e+00> : vector<4x16x16xf32>
    %16 = tpu.matmul %9, %12, %cst_16 {dimension_numbers = #tpu.dot_dimension_numbers<[2], [2], [1], [1], [0, 0, 0, 1, 1, 1], [0], [0]>} : vector<4x16x8xf32>, vector<4x16x8xf32>, vector<4x16x16xf32> -> vector<4x16x16xf32>
    "tpu.trace_stop"() : () -> ()
    %c0_17 = arith.constant 0 : index
    %c0_18 = arith.constant 0 : index
    %17 = vector.load %arg2[%c0_17, %c0_18] : memref<16x16xf32, #tpu.memory_space<vmem>>, vector<16x16xf32>
    %18 = vector.shape_cast %17 : vector<16x16xf32> to vector<1x16x16xf32>
    %19 = vector.broadcast %18 : vector<1x16x16xf32> to vector<4x16x16xf32>
    %20 = arith.addf %16, %19 : vector<4x16x16xf32>
    %cst_19 = arith.constant 0.176776692 : f32
    %21 = vector.broadcast %cst_19 : f32 to vector<4x16x16xf32>
    %22 = arith.mulf %20, %21 : vector<4x16x16xf32>
    %cst_20 = arith.constant dense<0xFF800000> : vector<4x16xf32>
    %23 = vector.multi_reduction <maximumf>, %22, %cst_20 [2] : vector<4x16x16xf32> to vector<4x16xf32>
    %24 = vector.shape_cast %23 : vector<4x16xf32> to vector<4x16x1xf32>
    %25 = vector.broadcast %24 : vector<4x16x1xf32> to vector<4x16x16xf32>
    %26 = arith.subf %22, %25 : vector<4x16x16xf32>
    %27 = math.exp %26 : vector<4x16x16xf32>
    %cst_21 = arith.constant dense<0.000000e+00> : vector<4x16xf32>
    %28 = vector.multi_reduction <add>, %27, %cst_21 [2] : vector<4x16x16xf32> to vector<4x16xf32>
    %29 = vector.shape_cast %28 : vector<4x16xf32> to vector<4x16x1xf32>
    %30 = tpu.reciprocal %29 {approx = true} : vector<4x16x1xf32> -> vector<4x16x1xf32>
    %31 = vector.broadcast %30 : vector<4x16x1xf32> to vector<4x16x16xf32>
    %32 = arith.mulf %27, %31 : vector<4x16x16xf32>
    "tpu.trace_start"() <{level = 10 : i32, message = "hqk,hkd->hqd"}> : () -> ()
    %cst_22 = arith.constant dense<0.000000e+00> : vector<4x16x8xf32>
    %33 = tpu.matmul %32, %15, %cst_22 {dimension_numbers = #tpu.dot_dimension_numbers<[2], [1], [1], [2], [0, 0, 0, 1, 1, 2], [0], [0]>} : vector<4x16x16xf32>, vector<4x16x8xf32>, vector<4x16x8xf32> -> vector<4x16x8xf32>
    "tpu.trace_stop"() : () -> ()
    %c0_23 = arith.constant 0 : index
    %c0_24 = arith.constant 0 : index
    %c0_25 = arith.constant 0 : index
    %c0_26 = arith.constant 0 : index
    %34 = vector.load %arg6[%c0_23, %c0_24, %c0_25, %c0_26] : memref<1x4x8x32xf32, #tpu.memory_space<vmem>>, vector<1x4x8x32xf32>
    %35 = vector.shape_cast %34 : vector<1x4x8x32xf32> to vector<4x8x32xf32>
    "tpu.trace_start"() <{level = 10 : i32, message = "hsd,hde->hse"}> : () -> ()
    %cst_27 = arith.constant dense<0.000000e+00> : vector<4x16x32xf32>
    %36 = tpu.matmul %33, %35, %cst_27 {dimension_numbers = #tpu.dot_dimension_numbers<[2], [1], [1], [2], [0, 0, 0, 1, 1, 2], [0], [0]>} : vector<4x16x8xf32>, vector<4x8x32xf32>, vector<4x16x32xf32> -> vector<4x16x32xf32>
    "tpu.trace_stop"() : () -> ()
    %cst_28 = arith.constant dense<0.000000e+00> : vector<16x32xf32>
    %37 = vector.multi_reduction <add>, %36, %cst_28 [0] : vector<4x16x32xf32> to vector<16x32xf32>
    %c0_29 = arith.constant 0 : index
    %c0_30 = arith.constant 0 : index
    %c0_31 = arith.constant 0 : index
    %38 = vector.load %arg7[%c0_29, %c0_30, %c0_31] : memref<1x1x32xf32, #tpu.memory_space<vmem>>, vector<1x1x32xf32>
    %39 = vector.shape_cast %38 : vector<1x1x32xf32> to vector<1x32xf32>
    %40 = vector.broadcast %39 : vector<1x32xf32> to vector<16x32xf32>
    %41 = arith.addf %37, %40 : vector<16x32xf32>
    %42 = arith.addf %41, %3 : vector<16x32xf32>
    %cst_32 = arith.constant dense<0.000000e+00> : vector<16xf32>
    %43 = vector.multi_reduction <add>, %42, %cst_32 [1] : vector<16x32xf32> to vector<16xf32>
    %44 = vector.shape_cast %43 : vector<16xf32> to vector<16x1xf32>
    %cst_33 = arith.constant 3.200000e+01 : f32
    %45 = vector.broadcast %cst_33 : f32 to vector<16x1xf32>
    %46 = arith.divf %44, %45 : vector<16x1xf32>
    %47 = vector.broadcast %46 : vector<16x1xf32> to vector<16x32xf32>
    %48 = arith.subf %42, %47 : vector<16x32xf32>
    %49 = arith.mulf %48, %48 : vector<16x32xf32>
    %cst_34 = arith.constant dense<0.000000e+00> : vector<16xf32>
    %50 = vector.multi_reduction <add>, %49, %cst_34 [1] : vector<16x32xf32> to vector<16xf32>
    %51 = vector.shape_cast %50 : vector<16xf32> to vector<16x1xf32>
    %cst_35 = arith.constant 3.200000e+01 : f32
    %52 = vector.broadcast %cst_35 : f32 to vector<16x1xf32>
    %53 = arith.divf %51, %52 : vector<16x1xf32>
    %54 = vector.broadcast %46 : vector<16x1xf32> to vector<16x32xf32>
    %55 = arith.subf %42, %54 : vector<16x32xf32>
    %cst_36 = arith.constant 9.99999974E-6 : f32
    %56 = vector.broadcast %cst_36 : f32 to vector<16x1xf32>
    %57 = arith.addf %53, %56 : vector<16x1xf32>
    %58 = math.rsqrt %57 : vector<16x1xf32>
    %59 = vector.broadcast %58 : vector<16x1xf32> to vector<16x32xf32>
    %60 = arith.mulf %55, %59 : vector<16x32xf32>
    %c0_37 = arith.constant 0 : index
    %c0_38 = arith.constant 0 : index
    %c0_39 = arith.constant 0 : index
    %61 = vector.load %arg8[%c0_37, %c0_38, %c0_39] : memref<1x1x32xf32, #tpu.memory_space<vmem>>, vector<1x1x32xf32>
    %62 = vector.shape_cast %61 : vector<1x1x32xf32> to vector<1x32xf32>
    %63 = vector.broadcast %62 : vector<1x32xf32> to vector<16x32xf32>
    %64 = arith.mulf %60, %63 : vector<16x32xf32>
    %c0_40 = arith.constant 0 : index
    %c0_41 = arith.constant 0 : index
    %c0_42 = arith.constant 0 : index
    %65 = vector.load %arg9[%c0_40, %c0_41, %c0_42] : memref<1x1x32xf32, #tpu.memory_space<vmem>>, vector<1x1x32xf32>
    %66 = vector.shape_cast %65 : vector<1x1x32xf32> to vector<1x32xf32>
    %67 = vector.broadcast %66 : vector<1x32xf32> to vector<16x32xf32>
    %68 = arith.addf %64, %67 : vector<16x32xf32>
    %c0_43 = arith.constant 0 : index
    %c0_44 = arith.constant 0 : index
    %c0_45 = arith.constant 0 : index
    %69 = vector.load %arg12[%c0_43, %c0_44, %c0_45] : memref<1x32x128xf32, #tpu.memory_space<vmem>>, vector<1x32x128xf32>
    %70 = vector.shape_cast %69 : vector<1x32x128xf32> to vector<32x128xf32>
    %cst_46 = arith.constant dense<0.000000e+00> : vector<16x128xf32>
    %71 = tpu.matmul %68, %70, %cst_46 {dimension_numbers = #tpu.dot_dimension_numbers<[1], [0], [0], [1], [0, 0, 1, 1], [], []>} : vector<16x32xf32>, vector<32x128xf32>, vector<16x128xf32> -> vector<16x128xf32>
    %c0_47 = arith.constant 0 : index
    %c0_48 = arith.constant 0 : index
    %c0_49 = arith.constant 0 : index
    %72 = vector.load %arg13[%c0_47, %c0_48, %c0_49] : memref<1x1x128xf32, #tpu.memory_space<vmem>>, vector<1x1x128xf32>
    %73 = vector.shape_cast %72 : vector<1x1x128xf32> to vector<1x128xf32>
    %74 = vector.broadcast %73 : vector<1x128xf32> to vector<16x128xf32>
    %75 = arith.addf %71, %74 : vector<16x128xf32>
    %cst_50 = arith.constant 0.000000e+00 : f32
    %76 = vector.broadcast %cst_50 : f32 to vector<16x128xf32>
    %77 = arith.maximumf %75, %76 : vector<16x128xf32>
    %c0_51 = arith.constant 0 : index
    %c0_52 = arith.constant 0 : index
    %c0_53 = arith.constant 0 : index
    %78 = vector.load %arg14[%c0_51, %c0_52, %c0_53] : memref<1x128x32xf32, #tpu.memory_space<vmem>>, vector<1x128x32xf32>
    %79 = vector.shape_cast %78 : vector<1x128x32xf32> to vector<128x32xf32>
    %cst_54 = arith.constant dense<0.000000e+00> : vector<16x32xf32>
    %80 = tpu.matmul %77, %79, %cst_54 {dimension_numbers = #tpu.dot_dimension_numbers<[1], [0], [0], [1], [0, 0, 1, 1], [], []>} : vector<16x128xf32>, vector<128x32xf32>, vector<16x32xf32> -> vector<16x32xf32>
    %c0_55 = arith.constant 0 : index
    %c0_56 = arith.constant 0 : index
    %c0_57 = arith.constant 0 : index
    %81 = vector.load %arg15[%c0_55, %c0_56, %c0_57] : memref<1x1x32xf32, #tpu.memory_space<vmem>>, vector<1x1x32xf32>
    %82 = vector.shape_cast %81 : vector<1x1x32xf32> to vector<1x32xf32>
    %83 = vector.broadcast %82 : vector<1x32xf32> to vector<16x32xf32>
    %84 = arith.addf %80, %83 : vector<16x32xf32>
    %85 = arith.addf %84, %68 : vector<16x32xf32>
    %cst_58 = arith.constant dense<0.000000e+00> : vector<16xf32>
    %86 = vector.multi_reduction <add>, %85, %cst_58 [1] : vector<16x32xf32> to vector<16xf32>
    %87 = vector.shape_cast %86 : vector<16xf32> to vector<16x1xf32>
    %cst_59 = arith.constant 3.200000e+01 : f32
    %88 = vector.broadcast %cst_59 : f32 to vector<16x1xf32>
    %89 = arith.divf %87, %88 : vector<16x1xf32>
    %90 = vector.broadcast %89 : vector<16x1xf32> to vector<16x32xf32>
    %91 = arith.subf %85, %90 : vector<16x32xf32>
    %92 = arith.mulf %91, %91 : vector<16x32xf32>
    %cst_60 = arith.constant dense<0.000000e+00> : vector<16xf32>
    %93 = vector.multi_reduction <add>, %92, %cst_60 [1] : vector<16x32xf32> to vector<16xf32>
    %94 = vector.shape_cast %93 : vector<16xf32> to vector<16x1xf32>
    %cst_61 = arith.constant 3.200000e+01 : f32
    %95 = vector.broadcast %cst_61 : f32 to vector<16x1xf32>
    %96 = arith.divf %94, %95 : vector<16x1xf32>
    %97 = vector.broadcast %89 : vector<16x1xf32> to vector<16x32xf32>
    %98 = arith.subf %85, %97 : vector<16x32xf32>
    %cst_62 = arith.constant 9.99999974E-6 : f32
    %99 = vector.broadcast %cst_62 : f32 to vector<16x1xf32>
    %100 = arith.addf %96, %99 : vector<16x1xf32>
    %101 = math.rsqrt %100 : vector<16x1xf32>
    %102 = vector.broadcast %101 : vector<16x1xf32> to vector<16x32xf32>
    %103 = arith.mulf %98, %102 : vector<16x32xf32>
    %c0_63 = arith.constant 0 : index
    %c0_64 = arith.constant 0 : index
    %c0_65 = arith.constant 0 : index
    %104 = vector.load %arg10[%c0_63, %c0_64, %c0_65] : memref<1x1x32xf32, #tpu.memory_space<vmem>>, vector<1x1x32xf32>
    %105 = vector.shape_cast %104 : vector<1x1x32xf32> to vector<1x32xf32>
    %106 = vector.broadcast %105 : vector<1x32xf32> to vector<16x32xf32>
    %107 = arith.mulf %103, %106 : vector<16x32xf32>
    %c0_66 = arith.constant 0 : index
    %c0_67 = arith.constant 0 : index
    %c0_68 = arith.constant 0 : index
    %108 = vector.load %arg11[%c0_66, %c0_67, %c0_68] : memref<1x1x32xf32, #tpu.memory_space<vmem>>, vector<1x1x32xf32>
    %109 = vector.shape_cast %108 : vector<1x1x32xf32> to vector<1x32xf32>
    %110 = vector.broadcast %109 : vector<1x32xf32> to vector<16x32xf32>
    %111 = arith.addf %107, %110 : vector<16x32xf32>
    %c0_69 = arith.constant 0 : index
    %c0_70 = arith.constant 0 : index
    %112 = vector.load %arg16[%c0_69, %c0_70] : memref<16x32xf32, #tpu.memory_space<vmem>>, vector<16x32xf32>
    tpu.vector_store %arg16[%c0_69, %c0_70], %111 {strides = array<i32>} : memref<16x32xf32, #tpu.memory_space<vmem>>, vector<16x32xf32>,
    return
  }
  func.func @transform_0(%arg0: i32) -> (i32, i32) {
    %c0_i32 = arith.constant 0 : i32
    %c0_i32_0 = arith.constant 0 : i32
    %c0_i32_1 = arith.constant 0 : i32
    return %c0_i32, %c0_i32_0 : i32, i32
  }
  func.func @transform_1(%arg0: i32) -> (i32, i32) {
    %c0_i32 = arith.constant 0 : i32
    %c0_i32_0 = arith.constant 0 : i32
    %c0_i32_1 = arith.constant 0 : i32
    return %c0_i32, %c0_i32_0 : i32, i32
  }
  func.func @transform_2(%arg0: i32) -> (i32, i32, i32, i32) {
    %c0_i32 = arith.constant 0 : i32
    %c0_i32_0 = arith.constant 0 : i32
    %c0_i32_1 = arith.constant 0 : i32
    %c0_i32_2 = arith.constant 0 : i32
    return %arg0, %c0_i32, %c0_i32_0, %c0_i32_1 : i32, i32, i32, i32
  }
  func.func @transform_3(%arg0: i32) -> (i32, i32, i32, i32) {
    %c0_i32 = arith.constant 0 : i32
    %c0_i32_0 = arith.constant 0 : i32
    %c0_i32_1 = arith.constant 0 : i32
    %c0_i32_2 = arith.constant 0 : i32
    return %arg0, %c0_i32, %c0_i32_0, %c0_i32_1 : i32, i32, i32, i32
  }
  func.func @transform_4(%arg0: i32) -> (i32, i32, i32, i32) {
    %c0_i32 = arith.constant 0 : i32
    %c0_i32_0 = arith.constant 0 : i32
    %c0_i32_1 = arith.constant 0 : i32
    %c0_i32_2 = arith.constant 0 : i32
    return %arg0, %c0_i32, %c0_i32_0, %c0_i32_1 : i32, i32, i32, i32
  }
  func.func @transform_5(%arg0: i32) -> (i32, i32, i32, i32) {
    %c0_i32 = arith.constant 0 : i32
    %c0_i32_0 = arith.constant 0 : i32
    %c0_i32_1 = arith.constant 0 : i32
    %c0_i32_2 = arith.constant 0 : i32
    return %arg0, %c0_i32, %c0_i32_0, %c0_i32_1 : i32, i32, i32, i32
  }
  func.func @transform_6(%arg0: i32) -> (i32, i32, i32) {
    %c0_i32 = arith.constant 0 : i32
    %c0_i32_0 = arith.constant 0 : i32
    %c0_i32_1 = arith.constant 0 : i32
    return %arg0, %c0_i32, %c0_i32_0 : i32, i32, i32
  }
  func.func @transform_7(%arg0: i32) -> (i32, i32, i32) {
    %c0_i32 = arith.constant 0 : i32
    %c0_i32_0 = arith.constant 0 : i32
    %c0_i32_1 = arith.constant 0 : i32
    return %arg0, %c0_i32, %c0_i32_0 : i32, i32, i32
  }
  func.func @transform_8(%arg0: i32) -> (i32, i32, i32) {
    %c0_i32 = arith.constant 0 : i32
    %c0_i32_0 = arith.constant 0 : i32
    %c0_i32_1 = arith.constant 0 : i32
    return %arg0, %c0_i32, %c0_i32_0 : i32, i32, i32
  }
  func.func @transform_9(%arg0: i32) -> (i32, i32, i32) {
    %c0_i32 = arith.constant 0 : i32
    %c0_i32_0 = arith.constant 0 : i32
    %c0_i32_1 = arith.constant 0 : i32
    return %arg0, %c0_i32, %c0_i32_0 : i32, i32, i32
  }
  func.func @transform_10(%arg0: i32) -> (i32, i32, i32) {
    %c0_i32 = arith.constant 0 : i32
    %c0_i32_0 = arith.constant 0 : i32
    %c0_i32_1 = arith.constant 0 : i32
    return %arg0, %c0_i32, %c0_i32_0 : i32, i32, i32
  }
  func.func @transform_11(%arg0: i32) -> (i32, i32, i32) {
    %c0_i32 = arith.constant 0 : i32
    %c0_i32_0 = arith.constant 0 : i32
    %c0_i32_1 = arith.constant 0 : i32
    return %arg0, %c0_i32, %c0_i32_0 : i32, i32, i32
  }
  func.func @transform_12(%arg0: i32) -> (i32, i32, i32) {
    %c0_i32 = arith.constant 0 : i32
    %c0_i32_0 = arith.constant 0 : i32
    %c0_i32_1 = arith.constant 0 : i32
    return %arg0, %c0_i32, %c0_i32_0 : i32, i32, i32
  }
  func.func @transform_13(%arg0: i32) -> (i32, i32, i32) {
    %c0_i32 = arith.constant 0 : i32
    %c0_i32_0 = arith.constant 0 : i32
    %c0_i32_1 = arith.constant 0 : i32
    return %arg0, %c0_i32, %c0_i32_0 : i32, i32, i32
  }
  func.func @transform_14(%arg0: i32) -> (i32, i32, i32) {
    %c0_i32 = arith.constant 0 : i32
    %c0_i32_0 = arith.constant 0 : i32
    %c0_i32_1 = arith.constant 0 : i32
    return %arg0, %c0_i32, %c0_i32_0 : i32, i32, i32
  }
  func.func @transform_15(%arg0: i32) -> (i32, i32) {
    %c0_i32 = arith.constant 0 : i32
    %c0_i32_0 = arith.constant 0 : i32
    %c0_i32_1 = arith.constant 0 : i32
    return %c0_i32, %c0_i32_0 : i32, i32
  }
}

</mosaic_0001>

<bundles_post_ra>
// kernel: tpu_custom_call.1
= control target key start
LH: loop header
LB: loop body
LE: loop exit
PB: predicated region body
PF: predicated region fallthrough
CT: control target
= control target key end

     0   :  { %s4440_s0 = inlined_call_operand.vmem [shape: f32[16,32], index: 0, kind: input, shape index: {}]   ;;  %s4441_s1 = inlined_call_operand.vmem [shape: f32[16,16], index: 1, kind: input, shape index: {}]   ;;  %s4442_s2 = inlined_call_operand.vmem [shape: f32[2,4,32,8], index: 2, kind: input, shape index: {}]   ;;  %s4443_s3 = inlined_call_operand.vmem [shape: f32[2,4,32,8], index: 3, kind: input, shape index: {}]   ;;  %s4444_s4 = inlined_call_operand.vmem [shape: f32[2,4,32,8], index: 4, kind: input, shape index: {}]   ;;  %s4445_s5 = inlined_call_operand.vmem [shape: f32[2,4,8,32], index: 5, kind: input, shape index: {}]   ;;  %s4446_s6 = inlined_call_operand.vmem [shape: f32[2,1,32], index: 6, kind: input, shape index: {}]   ;;  %s4447_s7 = inlined_call_operand.vmem [shape: f32[2,1,32], index: 7, kind: input, shape index: {}]   ;;  %s4448_s8 = inlined_call_operand.vmem [shape: f32[2,1,32], index: 8, kind: input, shape index: {}]   ;;  %s4449_s9 = inlined_call_operand.vmem [shape: f32[2,1,32], index: 9, kind: input, shape index: {}]   ;;  %s4450_s10 = inlined_call_operand.vmem [shape: f32[2,1,32], index: 10, kind: input, shape index: {}]   ;;  %s4451_s11 = inlined_call_operand.vmem [shape: f32[2,32,128], index: 11, kind: input, shape index: {}]   ;;  %s4452_s12 = inlined_call_operand.vmem [shape: f32[2,1,128], index: 12, kind: input, shape index: {}]   ;;  %s4453_s13 = inlined_call_operand.vmem [shape: f32[2,128,32], index: 13, kind: input, shape index: {}]   ;;  %s4454_s14 = inlined_call_operand.vmem [shape: f32[2,1,32], index: 14, kind: input, shape index: {}]   ;;  %s4455_s15 = inlined_call_operand.hbm [shape: f32[16,32], index: 15, kind: output, shape index: {}]  }
   0x1   :  { %4463 = sst [smem:[#allocation9_spill]] %s4440_s0 }
   0x2   :  { %4464 = sst [smem:[#allocation10_spill]] %s4441_s1 }
   0x3   :  { %4465 = sst [smem:[#allocation11_spill]] %s4442_s2 }
   0x4   :  { %4466 = sst [smem:[#allocation12_spill]] %s4443_s3 }
   0x5   :  { %4467 = sst [smem:[#allocation13_spill]] %s4444_s4 }
   0x6   :  { %4468 = sst [smem:[#allocation14_spill]] %s4445_s5 }
   0x7   :  { %4469 = sst [smem:[#allocation15_spill]] %s4455_s15 }
   0x8   :  { %20 = vsyncpa [#allocation3], 0  ;;  %s4066_s18 = smov 0  }
   0x9 LB: > { %4470 = sst [smem:[#allocation5_spill]] %s3981_s18  ;;  %s4072_s19 = sadd.s32 4294967295, %s3981_s18   ;;  %s3981_s18 = sphi %s4066_s18, %s26_s18  }
   0xa   : > { %p3229_p0 = scmp.ge.s32.totalorder %s3981_s18, 1  ;;  %p539_p1 = scmp.lt.s32.totalorder %s3981_s18, 3 }
   0xc   : > { %p540_p2 = pnand %p3229_p0, %p539_p1 }
   0xe   : > { %543 = sbr.rel (%p540_p2) target bundleno = 2364 (0x93c), region = 80 }
  0x15   : > { %p628_p3 = scmp.lt.s32.totalorder %s4072_s19, 1  ;;  %s4471_s2 = sld [smem:[#allocation11_spill]] }
  0x16   : > { %s4472_s3 = sld [smem:[#allocation12_spill]]  ;;  %s4474_s4 = sld [smem:[#allocation13_spill]] }
  0x17   : > { %s4078_s20 = scalar_select %p628_p3, %s4072_s19, 1 }
  0x18   : > { %s4476_s5 = sld [smem:[#allocation14_spill]]  ;;  %p3242_p4 = scmp.ne.s32.totalorder %s4072_s19, 0 }
  0x19   : > { %s3312_s21 = sshll.u32 %s4078_s20, 7  ;;  %s3315_s22 = sshll.u32 %s4078_s20, 5  ;;  %vm685_vm0 = vcmask (!%p3242_p4), 261120  }
  0x1a   : > { %s650_s23 = scalar_lea.vmem %s4446_s6, %s4078_s20  ;;  %s662_s17 = scalar_lea.vmem %s4450_s10, %s4078_s20 }
  0x1b   : > { %s4085_s25 = scalar_lea.vmem %s4471_s2, %s3312_s21  ;;  %s4125_s0 = scalar_lea.vmem %s4451_s11, %s3315_s22 }
  0x1c   : > { %s4090_s28 = scalar_lea.vmem %s4472_s3, %s3312_s21  ;;  %s4095_s16 = scalar_lea.vmem %s4474_s4, %s3312_s21 }
  0x1d   : > { %4473 = sst [smem:[#allocation6_spill]] %s4090_s28  ;;  %s656_s28 = scalar_lea.vmem %s4448_s8, %s4078_s20 }
  0x1e   : > { %4475 = sst [smem:[#allocation7_spill]] %s4095_s16  ;;  %s4100_s15 = scalar_lea.vmem %s4476_s5, %s3315_s22 }
  0x1f   : > { %4477 = sst [smem:[#allocation8_spill]] %s4100_s15  ;;  %s670_s24 = scalar_lea.vmem %s4452_s12, %s4078_s20 }
  0x20   : > { %s4134_s27 = scalar_lea.vmem %s4453_s13, %s3312_s21  ;;  %s678_s4 = scalar_lea.vmem %s4454_s14, %s4078_s20 }
  0x21   : > { %682 = sbr.rel (%p3242_p4) target bundleno = 41 (0x29), region = 84  ;;  %s4478_s15 = sld [smem:[#allocation9_spill]] (!%p3242_p4) }
  0x27   : > { %v683_v0 = vld [vmem:[%s4478_s15] sm:$0xff] (!%p3242_p4)  ;;  %v684_v1 = vld [vmem:[%s4478_s15 + $0x8] sm:$0xff] (!%p3242_p4) }
  0x28   : > { %686 = vst.msk [vmem:[#allocation2] sm:$0xff] %vm685_vm0, %v683_v0  ;;  %687 = vst.msk [vmem:[#allocation2 + $0x8] sm:$0xff] %vm685_vm0, %v684_v1 }
  0x29 PF: > { %v690_v2 = vld [vmem:[%s4085_s25] sm:$0xff]  ;;  %v691_v3 = vld [vmem:[%s4085_s25 + $0x8] sm:$0xff]  ;;  %vm706_vm1 = vcmask 261120   ;;  %s4479_s21 = sld [smem:[#allocation6_spill]]  ;;  %v692_v7 = vld [vmem:[%s4085_s25 + $0x10] sm:$0xff]  ;;  %s4480_s26 = sld [smem:[#allocation7_spill]] }
  0x2a   : > { %v702_v4 = vld [vmem:[%s4085_s25 + $0x60] sm:$0xff]  ;;  %v3712_v5 = vpack.c.bf16 %v691_v3, %v690_v2  ;;  %v703_v6 = vld [vmem:[%s4085_s25 + $0x68] sm:$0xff]  ;;  %v693_v8 = vld [vmem:[%s4085_s25 + $0x18] sm:$0xff]  ;;  %vm1647_vm2 = vcmask 64512   ;;  %s4483_s2 = sld [smem:[#allocation10_spill]]  ;;  %vm2004_vm4 = vcmask 130048   ;;  %s4485_s22 = scalar_lea.vmem %s4447_s7, %s4078_s20 }
  0x2b   : > { %v3736_v9 = vpack.c.bf16 %v703_v6, %v702_v4  ;;  %v3716_v10 = vpack.c.bf16 %v693_v8, %v692_v7  ;;  %v704_v11 = vld [vmem:[%s4085_s25 + $0x70] sm:$0xff]  ;;  %v705_v12 = vld [vmem:[%s4085_s25 + $0x78] sm:$0xff]  ;;  %v694_v15 = vld [vmem:[%s4085_s25 + $0x20] sm:$0xff]  ;;  %s4484_s30 = sld [smem:[#allocation8_spill]]  ;;  %p3892_p5 = scmp.eq.s32.totalorder %s4072_s19, 1 }
  0x2c   : > { %3713 = vmatprep.subr.bf16.mxu0 %v3712_v5  ;;  %v3740_v14 = vpack.c.bf16 %v705_v12, %v704_v11  ;;  %v695_v16 = vld [vmem:[%s4085_s25 + $0x28] sm:$0xff]  ;;  %v696_v21 = vld [vmem:[%s4085_s25 + $0x30] sm:$0xff]  ;;  %v697_v22 = vld [vmem:[%s4085_s25 + $0x38] sm:$0xff] }
  0x2d   : > { %3737 = vmatprep.subr.bf16.mxu1 %v3736_v9  ;;  %3715 = vmatpush3.bf16.msra.mxu0 %v3712_v5  ;;  %v3720_v19 = vpack.c.bf16 %v695_v16, %v694_v15  ;;  %v3724_v26 = vpack.c.bf16 %v697_v22, %v696_v21  ;;  %v698_v28 = vld [vmem:[%s4085_s25 + $0x40] sm:$0xff]  ;;  %v699_v29 = vld [vmem:[%s4085_s25 + $0x48] sm:$0xff]  ;;  %v700_v34 = vld [vmem:[%s4085_s25 + $0x50] sm:$0xff] }
  0x2e   : > { %3739 = vmatpush3.bf16.msra.mxu1 %v3736_v9  ;;  %3717 = vmatprep.subr.bf16.mxu0 %v3716_v10  ;;  %v3728_v32 = vpack.c.bf16 %v699_v29, %v698_v28  ;;  %v701_v35 = vld [vmem:[%s4085_s25 + $0x58] sm:$0xff]  ;;  %vm4251_vm3 = vmpackc.low %vm1647_vm2, %vm1647_vm2 }
  0x2f   : > { %v4155_v13 = vld [vmem:[#allocation2] sm:$0xff]  ;;  %v1018_v18 = vld [vmem:[%s4479_s21 + $0x28] sm:$0xff]  ;;  %3741 = vmatprep.subr.bf16.mxu1 %v3740_v14  ;;  %v1019_v23 = vld [vmem:[%s4479_s21 + $0x30] sm:$0xff]  ;;  %v3732_v38 = vpack.c.bf16 %v701_v35, %v700_v34 }
  0x30   : > { %3466 = vmatprep.mubr.msk.f32.mxu0 %vm706_vm1, %v4155_v13  ;;  %v1017_v17 = vld [vmem:[%s4479_s21 + $0x20] sm:$0xff]  ;;  %3499 = vmatprep.mubr.msk.f32.mxu1 %vm706_vm1, %v4155_v13  ;;  %v1020_v24 = vld [vmem:[%s4479_s21 + $0x38] sm:$0xff]  ;;  %v4169_v25 = vld [vmem:[#allocation2 + $0x8] sm:$0xff] }
  0x31   : > { %v3752_v20 = vpack.c.bf16 %v1018_v18, %v1017_v17  ;;  %3719 = vmatpush3.bf16.msra.mxu0 %v3716_v10  ;;  %v3756_v27 = vpack.c.bf16 %v1020_v24, %v1019_v23  ;;  %v1025_v30 = vld [vmem:[%s4479_s21 + $0x60] sm:$0xff]  ;;  %v1026_v31 = vld [vmem:[%s4479_s21 + $0x68] sm:$0xff]  ;;  %v1027_v36 = vld [vmem:[%s4479_s21 + $0x70] sm:$0xff] }
  0x32   : > { %3743 = vmatpush3.bf16.msra.mxu1 %v3740_v14  ;;  %3721 = vmatprep.subr.bf16.mxu0 %v3720_v19  ;;  %v3768_v33 = vpack.c.bf16 %v1026_v31, %v1025_v30  ;;  %v1028_v37 = vld [vmem:[%s4479_s21 + $0x78] sm:$0xff]  ;;  %v1013_v40 = vld [vmem:[%s4479_s21] sm:$0xff]  ;;  %v1014_v41 = vld [vmem:[%s4479_s21 + $0x8] sm:$0xff] }
  0x33   : > { %3753 = vmatprep.subr.bf16.mxu1 %v3752_v20  ;;  %v3772_v39 = vpack.c.bf16 %v1028_v37, %v1027_v36  ;;  %v1333_v42 = vld [vmem:[%s4480_s26 + $0x20] sm:$0xff]  ;;  %v1334_v43 = vld [vmem:[%s4480_s26 + $0x28] sm:$0xff]  ;;  %v3744_v44 = vpack.c.bf16 %v1014_v41, %v1013_v40  ;;  %v1015_v45 = vld [vmem:[%s4479_s21 + $0x10] sm:$0xff] }
  0x34   : > { %3467 = vmatmul.mubr.msk.f32.vlgmr.msra.gmra.mrb[0].mxu0 %vm706_vm1, %v4169_v25  ;;  %v1016_v46 = vld [vmem:[%s4479_s21 + $0x18] sm:$0xff]  ;;  %v3784_v47 = vpack.c.bf16 %v1334_v43, %v1333_v42  ;;  %v1335_v48 = vld [vmem:[%s4480_s26 + $0x30] sm:$0xff]  ;;  %v1021_v51 = vld [vmem:[%s4479_s21 + $0x40] sm:$0xff] }
  0x35   : > { %3723 = vmatpush3.bf16.msra.mxu0 %v3720_v19  ;;  %3500 = vmatmul.mubr.msk.f32.vlgmr.msra.gmra.mrb[0].mxu1 %vm706_vm1, %v4169_v25  ;;  %v1336_v49 = vld [vmem:[%s4480_s26 + $0x38] sm:$0xff]  ;;  %v3748_v50 = vpack.c.bf16 %v1016_v46, %v1015_v45  ;;  %v1022_v52 = vld [vmem:[%s4479_s21 + $0x48] sm:$0xff]  ;;  %v1341_v54 = vld [vmem:[%s4480_s26 + $0x60] sm:$0xff] }
  0x36   : > { %3755 = vmatpush3.bf16.msra.mxu1 %v3752_v20  ;;  %3725 = vmatprep.subr.bf16.mxu0 %v3724_v26  ;;  %v3788_v53 = vpack.c.bf16 %v1336_v49, %v1335_v48  ;;  %v1342_v55 = vld [vmem:[%s4480_s26 + $0x68] sm:$0xff]  ;;  %v3760_v56 = vpack.c.bf16 %v1022_v52, %v1021_v51  ;;  %v1023_v57 = vld [vmem:[%s4479_s21 + $0x50] sm:$0xff]  ;;  %v1024_v58 = vld [vmem:[%s4479_s21 + $0x58] sm:$0xff] }
  0x37   : > { %3757 = vmatprep.subr.bf16.mxu1 %v3756_v27  ;;  %3477 = vmatprep.mubr.msk.f32.mxu0 %vm706_vm1, %v4155_v13  ;;  %v3800_v59 = vpack.c.bf16 %v1342_v55, %v1341_v54  ;;  %v3764_v60 = vpack.c.bf16 %v1024_v58, %v1023_v57  ;;  %v1329_v61 = vld [vmem:[%s4480_s26] sm:$0xff]  ;;  %v1330_v62 = vld [vmem:[%s4480_s26 + $0x8] sm:$0xff]  ;;  %v1331_v0 = vld [vmem:[%s4480_s26 + $0x10] sm:$0xff] }
  0x38   : > { %3521 = vmatprep.mubr.msk.f32.mxu1 %vm706_vm1, %v4155_v13  ;;  %v3776_v63 = vpack.c.bf16 %v1330_v62, %v1329_v61  ;;  %v1332_v1 = vld [vmem:[%s4480_s26 + $0x18] sm:$0xff]  ;;  %v1337_v3 = vld [vmem:[%s4480_s26 + $0x40] sm:$0xff]  ;;  %v1338_v4 = vld [vmem:[%s4480_s26 + $0x48] sm:$0xff] }
  0x39   : > { %3727 = vmatpush3.bf16.msra.mxu0 %v3724_v26  ;;  %v3780_v2 = vpack.c.bf16 %v1332_v1, %v1331_v0  ;;  %v3792_v5 = vpack.c.bf16 %v1338_v4, %v1337_v3  ;;  %v1339_v6 = vld [vmem:[%s4480_s26 + $0x50] sm:$0xff]  ;;  %v1340_v7 = vld [vmem:[%s4480_s26 + $0x58] sm:$0xff]  ;;  %v1645_v48 = vld [vmem:[%s4483_s2] sm:$0xff] }
  0x3a   : > { %3759 = vmatpush3.bf16.msra.mxu1 %v3756_v27  ;;  %3729 = vmatprep.subr.bf16.mxu0 %v3728_v32  ;;  %v3796_v8 = vpack.c.bf16 %v1340_v7, %v1339_v6  ;;  %v1343_v9 = vld [vmem:[%s4480_s26 + $0x70] sm:$0xff]  ;;  %v1344_v10 = vld [vmem:[%s4480_s26 + $0x78] sm:$0xff] }
  0x3b   : > { %3769 = vmatprep.subr.bf16.mxu1 %v3768_v33  ;;  %v3804_v11 = vpack.c.bf16 %v1344_v10, %v1343_v9 }
  0x3c   : > { %3478 = vmatmul.mubr.msk.f32.vlgmr.msra.gmra.mrb[2].mxu0 %vm706_vm1, %v4169_v25 }
  0x3d   : > { %3522 = vmatmul.mubr.msk.f32.vlgmr.msra.gmra.mrb[2].mxu1 %vm706_vm1, %v4169_v25  ;;  %3731 = vmatpush3.bf16.msra.mxu0 %v3728_v32 }
  0x3e   : > { %3771 = vmatpush3.bf16.msra.mxu1 %v3768_v33  ;;  %3733 = vmatprep.subr.bf16.mxu0 %v3732_v38 }
  0x3f   : > { %3773 = vmatprep.subr.bf16.mxu1 %v3772_v39  ;;  %3488 = vmatprep.mubr.msk.f32.mxu0 %vm706_vm1, %v4155_v13 }
  0x40   : > { %3543 = vmatprep.mubr.msk.f32.mxu1 %vm706_vm1, %v4155_v13 }
  0x41   : > { %3735 = vmatpush3.bf16.msra.mxu0 %v3732_v38 }
  0x42   : > { %3775 = vmatpush3.bf16.msra.mxu1 %v3772_v39  ;;  %3745 = vmatprep.subr.bf16.mxu0 %v3744_v44 }
  0x43   : > { %3785 = vmatprep.subr.bf16.mxu1 %v3784_v47 }
  0x44   : > { %3489 = vmatmul.mubr.msk.f32.vlgmr.msra.gmra.mrb[4].mxu0 %vm706_vm1, %v4169_v25 }
  0x45   : > { %3544 = vmatmul.mubr.msk.f32.vlgmr.msra.gmra.mrb[4].mxu1 %vm706_vm1, %v4169_v25  ;;  %3747 = vmatpush3.bf16.msra.mxu0 %v3744_v44 }
  0x46   : > { %3749 = vmatprep.subr.bf16.mxu0 %v3748_v50  ;;  %3510 = vmatprep.mubr.msk.f32.mxu0 %vm706_vm1, %v4155_v13 }
  0x47   : > { %3787 = vmatpush3.bf16.msra.mxu1 %v3784_v47  ;;  %3565 = vmatprep.mubr.msk.f32.mxu1 %vm706_vm1, %v4155_v13  ;;  %v1646_v47 = vld [vmem:[%s4483_s2 + $0x8] sm:$0xff] }
  0x48   : > { %3789 = vmatprep.subr.bf16.mxu1 %v3788_v53 }
  0x49   : > { %3751 = vmatpush3.bf16.msra.mxu0 %v3748_v50 }
  0x4a   : > { %3761 = vmatprep.subr.bf16.mxu0 %v3760_v56 }
  0x4b   : > { %3791 = vmatpush3.bf16.msra.mxu1 %v3788_v53 }
  0x4c   : > { %3511 = vmatmul.mubr.msk.f32.vlgmr.msra.gmra.mrb[6].mxu0 %vm706_vm1, %v4169_v25  ;;  %3801 = vmatprep.subr.bf16.mxu1 %v3800_v59 }
  0x4d   : > { %3763 = vmatpush3.bf16.msra.mxu0 %v3760_v56  ;;  %3532 = vmatprep.mubr.msk.f32.mxu0 %vm706_vm1, %v4155_v13 }
  0x4e   : > { %3765 = vmatprep.subr.bf16.mxu0 %v3764_v60  ;;  %3566 = vmatmul.mubr.msk.f32.vlgmr.msra.gmra.mrb[6].mxu1 %vm706_vm1, %v4169_v25 }
  0x4f   : > { %3803 = vmatpush3.bf16.msra.mxu1 %v3800_v59  ;;  %3587 = vmatprep.mubr.msk.f32.mxu1 %vm706_vm1, %v4155_v13 }
  0x50   : > { %3805 = vmatprep.subr.bf16.mxu1 %v3804_v11 }
  0x51   : > { %3767 = vmatpush3.bf16.msra.mxu0 %v3764_v60 }
  0x52   : > { %3777 = vmatprep.subr.bf16.mxu0 %v3776_v63 }
  0x53   : > { %3807 = vmatpush3.bf16.msra.mxu1 %v3804_v11 }
  0x54   : > { %3533 = vmatmul.mubr.msk.f32.vlgmr.msra.gmra.mrb[8].mxu0 %vm706_vm1, %v4169_v25 }
  0x55   : > { %3779 = vmatpush3.bf16.msra.mxu0 %v3776_v63  ;;  %3554 = vmatprep.mubr.msk.f32.mxu0 %vm706_vm1, %v4155_v13 }
  0x56   : > { %3781 = vmatprep.subr.bf16.mxu0 %v3780_v2  ;;  %3588 = vmatmul.mubr.msk.f32.vlgmr.msra.gmra.mrb[8].mxu1 %vm706_vm1, %v4169_v25 }
  0x59   : > { %3783 = vmatpush3.bf16.msra.mxu0 %v3780_v2 }
  0x5a   : > { %3793 = vmatprep.subr.bf16.mxu0 %v3792_v5 }
  0x5c   : > { %3555 = vmatmul.mubr.msk.f32.vlgmr.msra.gmra.mrb[10].mxu0 %vm706_vm1, %v4169_v25 }
  0x5d   : > { %3795 = vmatpush3.bf16.msra.mxu0 %v3792_v5  ;;  %3576 = vmatprep.mubr.msk.f32.mxu0 %vm706_vm1, %v4155_v13 }
  0x5e   : > { %3797 = vmatprep.subr.bf16.mxu0 %v3796_v8 }
  0x61   : > { %3799 = vmatpush3.bf16.msra.mxu0 %v3796_v8 }
  0x64   : > { %3577 = vmatmul.mubr.msk.f32.vlgmr.msra.gmra.mrb[12].mxu0 %vm706_vm1, %v4169_v25 }
 0x107   : > { %v3468_v12 = vpop.f32.mrb[0].mxu0 }
 0x108   : > { %v779_v14 = vpop.f32.mrb[1].mxu0  ;;  %v3501_v15 = vpop.f32.mrb[0].mxu1 }
 0x109   : > { %3594 = vmatprep.mubr.msk.f32.mxu0 %vm1647_vm2, %v779_v14  ;;  %v1004_v16 = vpop.f32.mrb[1].mxu1 }
 0x10f   : > { %v3479_v17 = vpop.f32.mrb[2].mxu0 }
 0x110   : > { %v3523_v18 = vpop.f32.mrb[2].mxu1  ;;  %v854_v19 = vpop.f32.mrb[3].mxu0 }
 0x111   : > { %v1170_v20 = vpop.f32.mrb[3].mxu1  ;;  %3601 = vmatprep.mubr.msk.f32.mxu1 %vm1647_vm2, %v854_v19 }
 0x112   : > { %v3814_v22 = vpack.c.bf16 %v3523_v18, %v1170_v20 }
 0x114   : > { %3816 = vmatprep.subr.msk.bf16.mxu1 %vm4251_vm3, %v3814_v22 }
 0x115   : > { %3819 = vmatpush3.bf16.xpose.msk.msra.mxu1 %vm4251_vm3, %v3814_v22 }
 0x117   : > { %v3490_v23 = vpop.f32.mrb[4].mxu0 }
 0x118   : > { %v3545_v24 = vpop.f32.mrb[4].mxu1  ;;  %v929_v26 = vpop.f32.mrb[5].mxu0 }
 0x119   : > { %v1320_v27 = vpop.f32.mrb[5].mxu1 }
 0x11a   : > { %v3826_v28 = vpack.c.bf16 %v3545_v24, %v1320_v27 }
 0x11c   : > { %3602 = vmatmul.mubr.msk.f32.vlgmr.msra.gmra.mrb[10].mxu1 %vm1647_vm2, %v3479_v17  ;;  %3828 = vmatprep.subr.msk.bf16.mxu1 %vm4251_vm3, %v3826_v28 }
 0x11d   : > { %3831 = vmatpush3.bf16.xpose.msk.msra.mxu1 %vm4251_vm3, %v3826_v28  ;;  %3615 = vmatprep.mubr.msk.f32.mxu1 %vm1647_vm2, %v1004_v16 }
 0x11f   : > { %v3512_v29 = vpop.f32.mrb[6].mxu0 }
 0x120   : > { %v1095_v30 = vpop.f32.mrb[7].mxu0 }
 0x121   : > { %v3808_v31 = vpack.c.bf16 %v3512_v29, %v1095_v30  ;;  %v3567_v32 = vpop.f32.mrb[6].mxu1 }
 0x122   : > { %v1486_v33 = vpop.f32.mrb[7].mxu1 }
 0x123   : > { %3810 = vmatprep.subr.msk.bf16.mxu0 %vm4251_vm3, %v3808_v31  ;;  %v4267_v34 = vpack.c.bf16 %v3567_v32, %v1486_v33 }
 0x124   : > { %3616 = vmatmul.mubr.msk.f32.vlgmr.msra.gmra.mrb[12].mxu1 %vm1647_vm2, %v3501_v15  ;;  %3813 = vmatpush3.bf16.xpose.msk.msra.mxu0 %vm4251_vm3, %v3808_v31 }
 0x127   : > { %v3534_v35 = vpop.f32.mrb[8].mxu0 }
 0x128   : > { %v1245_v36 = vpop.f32.mrb[9].mxu0 }
 0x129   : > { %v3820_v37 = vpack.c.bf16 %v3534_v35, %v1245_v36  ;;  %v3589_v41 = vpop.f32.mrb[8].mxu1 }
 0x12a   : > { %v1636_v42 = vpop.f32.mrb[9].mxu1 }
 0x12b   : > { %3595 = vmatmul.mubr.msk.f32.vlgmr.msra.gmra.mrb[14].mxu0 %vm1647_vm2, %v3468_v12  ;;  %3822 = vmatprep.subr.msk.bf16.mxu0 %vm4251_vm3, %v3820_v37  ;;  %v3844_v43 = vpack.c.bf16 %v3589_v41, %v1636_v42 }
 0x12c   : > { %3825 = vmatpush3.bf16.xpose.msk.msra.mxu0 %vm4251_vm3, %v3820_v37  ;;  %3608 = vmatprep.mubr.msk.f32.mxu0 %vm1647_vm2, %v929_v26 }
 0x12d   : > { %3845 = vmatprep.subr.bf16.mxu1 %v3844_v43 }
 0x12e   : > { %3847 = vmatpush3.bf16.msra.mxu1 %v3844_v43 }
 0x12f   : > { %v3556_v38 = vpop.f32.mrb[10].mxu0 }
 0x130   : > { %v1411_v39 = vpop.f32.mrb[11].mxu0 }
 0x131   : > { %v3832_v40 = vpack.c.bf16 %v3556_v38, %v1411_v39 }
 0x133   : > { %3609 = vmatmul.mubr.msk.f32.vlgmr.msra.gmra.mrb[16].mxu0 %vm1647_vm2, %v3490_v23  ;;  %3833 = vmatprep.subr.bf16.mxu0 %v3832_v40 }
 0x134   : > { %3835 = vmatpush3.bf16.msra.mxu0 %v3832_v40 }
 0x135   : > { %3837 = vmatprep.subr.bf16.mxu0 %v4267_v34 }
 0x137   : > { %v3578_v44 = vpop.f32.mrb[12].mxu0 }
 0x138   : > { %v1561_v45 = vpop.f32.mrb[13].mxu0 }
 0x139   : > { %v4280_v46 = vpack.c.bf16 %v3578_v44, %v1561_v45 }
 0x1ef   : > { %v3603_v49 = vpop.f32.mrb[10].mxu1 }
 0x1f0   : > { %v1813_v50 = vpop.f32.mrb[11].mxu1  ;;  %v1819_v51 = vadd.f32 %v3603_v49, %v1646_v47 }
 0x1f1   : > { %v1814_v52 = vadd.f32 %v1813_v50, %v1645_v48 }
 0x1f2   : > { %v1999_v54 = vmul.f32 0.17677669, %v1819_v51 }
 0x1f3   : > { %v1998_v53 = vmul.f32 0.17677669, %v1814_v52 }
 0x1f4   : > { %v2014_v58 = vsel %vm2004_vm4, %v1999_v54, -inf }
 0x1f5   : > { %v2011_v55 = vsel %vm2004_vm4, %v1998_v53, -inf }
 0x1f6   : > { %2012 = vmax.xlane.f32.xlu1 %v2011_v55 }
 0x1f7   : > { %v3617_v56 = vpop.f32.mrb[12].mxu1 }
 0x1f8   : > { %v1987_v57 = vpop.f32.mrb[13].mxu1  ;;  %v1993_v3 = vadd.f32 %v3617_v56, %v1646_v47 }
 0x1f9   : > { %v1988_v6 = vadd.f32 %v1987_v57, %v1645_v48 }
 0x1fa   : > { %2015 = vmax.xlane.f32.xlu1 %v2014_v58  ;;  %v2003_v11 = vmul.f32 0.17677669, %v1993_v3 }
 0x1fb   : > { %v2002_v14 = vmul.f32 0.17677669, %v1988_v6 }
 0x1fc   : > { %v2026_v16 = vsel %vm2004_vm4, %v2003_v11, -inf }
 0x1fd   : > { %v2023_v17 = vsel %vm2004_vm4, %v2002_v14, -inf }
 0x1fe   : > { %v3596_v59 = vpop.f32.mrb[14].mxu0 }
 0x1ff   : > { %v1726_v60 = vpop.f32.mrb[15].mxu0  ;;  %v1732_v61 = vadd.f32 %v3596_v59, %v1646_v47 }
 0x200   : > { %v1727_v62 = vadd.f32 %v1726_v60, %v1645_v48 }
 0x201   : > { %v1997_v0 = vmul.f32 0.17677669, %v1732_v61 }
 0x202   : > { %v1996_v63 = vmul.f32 0.17677669, %v1727_v62 }
 0x203   : > { %v2008_v8 = vsel %vm2004_vm4, %v1997_v0, -inf }
 0x204   : > { %v2005_v1 = vsel %vm2004_vm4, %v1996_v63, -inf }
 0x205   : > { %2006 = vmax.xlane.f32.xlu0 %v2005_v1 }
 0x206   : > { %v3610_v2 = vpop.f32.mrb[16].mxu0 }
 0x207   : > { %v1906_v4 = vadd.f32 %v3610_v2, %v1646_v47  ;;  %v1900_v5 = vpop.f32.mrb[17].mxu0 }
 0x208   : > { %v1901_v7 = vadd.f32 %v1900_v5, %v1645_v48 }
 0x209   : > { %v2001_v9 = vmul.f32 0.17677669, %v1906_v4  ;;  %2009 = vmax.xlane.f32.xlu0 %v2008_v8 }
 0x20a   : > { %v2000_v10 = vmul.f32 0.17677669, %v1901_v7 }
 0x20b   : > { %v2020_v12 = vsel %vm2004_vm4, %v2001_v9, -inf }
 0x20c   : > { %2021 = vmax.xlane.f32.xlu1 %v2020_v12  ;;  %v2017_v15 = vsel %vm2004_vm4, %v2000_v10, -inf }
 0x20d   : > { %2018 = vmax.xlane.f32.xlu0 %v2017_v15 }
 0x210   : > { %2027 = vmax.xlane.f32.xlu1 %v2026_v16 }
 0x211   : > { %2024 = vmax.xlane.f32.xlu0 %v2023_v17 }
 0x283   : > { %v2013_v18 = vpop.xlane.xlu1 %2012 }
 0x284   : > { %v2031_v19 = vsub.f32 %v1998_v53, %v2013_v18 }
 0x286   : > { %v2041_v23 = vmul.f32 1.442695, %v2031_v19 }
 0x287   : > { %v2016_v20 = vpop.xlane.xlu1 %2015 }
 0x288   : > { %v2032_v24 = vsub.f32 %v1999_v54, %v2016_v20 }
 0x28a   : > { %v2043_v29 = vmul.f32 1.442695, %v2032_v24 }
 0x292   : > { %v2007_v21 = vpop.xlane.xlu0 %2006 }
 0x293   : > { %v2029_v22 = vsub.f32 %v1996_v63, %v2007_v21  ;;  %v2417_v21 = vld [vmem:[%s4484_s30] sm:$0xff] }
 0x295   : > { %v2037_v26 = vmul.f32 1.442695, %v2029_v22  ;;  %v2418_v22 = vld [vmem:[%s4484_s30 + $0x8] sm:$0xff] }
 0x296   : > { %v2010_v27 = vpop.xlane.xlu0 %2009  ;;  %3651 = vmatprep.subr.mxu1 %v2418_v22 }
 0x297   : > { %3905 = vpow2.f32 %v2037_v26  ;;  %v2030_v28 = vsub.f32 %v1997_v0, %v2010_v27 }
 0x298   : > { %3907 = vpow2.f32 %v2041_v23  ;;  %v2420_v23 = vld [vmem:[%s4484_s30 + $0x18] sm:$0xff] }
 0x299   : > { %v2039_v30 = vmul.f32 1.442695, %v2030_v28  ;;  %v2022_v31 = vpop.xlane.xlu1 %2021 }
 0x29a   : > { %v2034_v32 = vsub.f32 %v2001_v9, %v2022_v31  ;;  %v2019_v33 = vpop.xlane.xlu0 %2018 }
 0x29b   : > { %3909 = vpow2.f32 %v2039_v30  ;;  %v2033_v35 = vsub.f32 %v2000_v10, %v2019_v33 }
 0x29c   : > { %3911 = vpow2.f32 %v2043_v29  ;;  %v2047_v36 = vmul.f32 1.442695, %v2034_v32 }
 0x29d   : > { %v2045_v37 = vmul.f32 1.442695, %v2033_v35  ;;  %v2028_v38 = vpop.xlane.xlu1 %2027 }
 0x29e   : > { %v2036_v39 = vsub.f32 %v2003_v11, %v2028_v38  ;;  %v2025_v40 = vpop.xlane.xlu0 %2024 }
 0x29f   : > { %3913 = vpow2.f32 %v2045_v37  ;;  %v2035_v41 = vsub.f32 %v2002_v14, %v2025_v40 }
 0x2a0   : > { %3915 = vpow2.f32 %v2047_v36  ;;  %v2051_v43 = vmul.f32 1.442695, %v2036_v39 }
 0x2a1   : > { %v3906_v42 = vpop.eup %3905  ;;  %v2049_v44 = vmul.f32 1.442695, %v2035_v41 }
 0x2a2   : > { %v2053_v45 = vsel %vm2004_vm4, %v3906_v42, 0.0  ;;  %v3908_v47 = vpop.eup %3907 }
 0x2a3   : > { %3917 = vpow2.f32 %v2049_v44  ;;  %2054 = vadd.xlane.f32.xlu0 %v2053_v45  ;;  %v2059_v49 = vsel %vm2004_vm4, %v3908_v47, 0.0 }
 0x2a4   : > { %3919 = vpow2.f32 %v2051_v43 }
 0x2a5   : > { %v3910_v48 = vpop.eup %3909 }
 0x2a6   : > { %v2056_v50 = vsel %vm2004_vm4, %v3910_v48, 0.0  ;;  %v3912_v51 = vpop.eup %3911 }
 0x2a7   : > { %2060 = vadd.xlane.f32.xlu0 %v2059_v49  ;;  %2057 = vadd.xlane.f32.xlu1 %v2056_v50  ;;  %v2062_v53 = vsel %vm2004_vm4, %v3912_v51, 0.0 }
 0x2a9   : > { %v3914_v52 = vpop.eup %3913 }
 0x2aa   : > { %v2065_v54 = vsel %vm2004_vm4, %v3914_v52, 0.0  ;;  %v3916_v55 = vpop.eup %3915 }
 0x2ab   : > { %2063 = vadd.xlane.f32.xlu1 %v2062_v53  ;;  %2066 = vadd.xlane.f32.xlu0 %v2065_v54  ;;  %v2068_v57 = vsel %vm2004_vm4, %v3916_v55, 0.0  ;;  %v3299_v53 = vld [vmem:[%s650_s23] ss:$0 sm:$0xff] }
 0x2ad   : > { %v3918_v56 = vpop.eup %3917 }
 0x2ae   : > { %v2071_v58 = vsel %vm2004_vm4, %v3918_v56, 0.0  ;;  %v3920_v59 = vpop.eup %3919 }
 0x2af   : > { %2069 = vadd.xlane.f32.xlu1 %v2068_v57  ;;  %2072 = vadd.xlane.f32.xlu0 %v2071_v58  ;;  %v2074_v60 = vsel %vm2004_vm4, %v3920_v59, 0.0 }
 0x2b3   : > { %2075 = vadd.xlane.f32.xlu1 %v2074_v60 }
 0x330   : > { %v2055_v61 = vpop.xlane.xlu0 %2054 }
 0x331   : > { %3921 = vrcp.f32 %v2055_v61 }
 0x334   : > { %v2058_v62 = vpop.xlane.xlu1 %2057  ;;  %v2061_v63 = vpop.xlane.xlu0 %2060 }
 0x335   : > { %3923 = vrcp.f32 %v2058_v62 }
 0x336   : > { %3925 = vrcp.f32 %v2061_v63 }
 0x338   : > { %v2064_v0 = vpop.xlane.xlu1 %2063  ;;  %v2067_v1 = vpop.xlane.xlu0 %2066 }
 0x339   : > { %3927 = vrcp.f32 %v2064_v0 }
 0x33a   : > { %3929 = vrcp.f32 %v2067_v1 }
 0x33b   : > { %v3922_v2 = vpop.eup %3921 }
 0x33c   : > { %v2070_v3 = vpop.xlane.xlu1 %2069  ;;  %v2073_v4 = vpop.xlane.xlu0 %2072  ;;  %v2085_v5 = vmul.f32 %v3922_v2, %v3906_v42 }
 0x33d   : > { %3931 = vrcp.f32 %v2070_v3 }
 0x33e   : > { %3933 = vrcp.f32 %v2073_v4  ;;  %3622 = vmatprep.mubr.msk.f32.mxu0 %vm2004_vm4, %v2085_v5 }
 0x33f   : > { %v3924_v6 = vpop.eup %3923 }
 0x340   : > { %v3926_v7 = vpop.eup %3925  ;;  %v2086_v8 = vmul.f32 %v3924_v6, %v3910_v48  ;;  %v2076_v9 = vpop.xlane.xlu1 %2075 }
 0x341   : > { %3935 = vrcp.f32 %v2076_v9  ;;  %v2087_v10 = vmul.f32 %v3926_v7, %v3908_v47  ;;  %v2816_v9 = vld [vmem:[%s4125_s0 + $0x8] sm:$0xff] }
 0x342   : > { %3623 = vmatmul.mubr.msk.f32.vlgmr.msra.gmra.mrb[18].mxu0 %vm2004_vm4, %v2086_v8  ;;  %v2815_v8 = vld [vmem:[%s4125_s0] sm:$0xff] }
 0x343   : > { %v3928_v11 = vpop.eup %3927  ;;  %3839 = vmatpush3.bf16.msra.mxu0 %v4267_v34  ;;  %3629 = vmatprep.mubr.msk.f32.mxu0 %vm2004_vm4, %v2087_v10  ;;  %v3848_v10 = vpack.c.bf16 %v2816_v9, %v2815_v8 }
 0x344   : > { %v3930_v12 = vpop.eup %3929  ;;  %v2088_v14 = vmul.f32 %v3928_v11, %v3912_v51  ;;  %3841 = vmatprep.subr.bf16.mxu0 %v4280_v46  ;;  %v2817_v11 = vld [vmem:[%s4125_s0 + $0x10] sm:$0xff] }
 0x345   : > { %v2089_v15 = vmul.f32 %v3930_v12, %v3914_v52  ;;  %v2818_v12 = vld [vmem:[%s4125_s0 + $0x18] sm:$0xff] }
 0x346   : > { %3630 = vmatmul.mubr.msk.f32.vlgmr.msra.gmra.mrb[20].mxu0 %vm2004_vm4, %v2088_v14  ;;  %v3852_v14 = vpack.c.bf16 %v2818_v12, %v2817_v11 }
 0x347   : > { %v3932_v16 = vpop.eup %3931  ;;  %3843 = vmatpush3.bf16.msra.mxu0 %v4280_v46  ;;  %3636 = vmatprep.mubr.msk.f32.mxu0 %vm2004_vm4, %v2089_v15  ;;  %v2419_v46 = vld [vmem:[%s4484_s30 + $0x10] sm:$0xff]  ;;  %v2909_v15 = vld [vmem:[%s4134_s27] sm:$0xff]  ;;  %s3983_s30 = smov [#allocation2]  }
 0x348   : > { %v3934_v17 = vpop.eup %3933  ;;  %v2090_v34 = vmul.f32 %v3932_v16, %v3916_v55  ;;  %3646 = vmatprep.subr.mxu0 %v2417_v21  ;;  %v2910_v16 = vld [vmem:[%s4134_s27 + $0x8] sm:$0xff]  ;;  %s3061_s16 = sshll.u32 %s3983_s30, 4  ;;  %s3062_s16 = int_to_ptr.vmem [resolvable:$true] %s3061_s16 }
 0x349   : > { %v2091_v18 = vmul.f32 %v3934_v17, %v3918_v56  ;;  %v2911_v17 = vld [vmem:[%s4134_s27 + $0x10] sm:$0xff]  ;;  %s3945_s5 = scalar_lea.vmem %s3062_s16, 256  ;;  %p3952_p9 = scmp.lt.s32.totalorder %s3062_s16, %s3062_s16 }
 0x34a   : > { %3637 = vmatmul.mubr.msk.f32.vlgmr.msra.gmra.mrb[22].mxu0 %vm2004_vm4, %v2090_v34  ;;  %v3856_v34 = vpack.c.bf16 %v2910_v16, %v2909_v15  ;;  %p3946_p6 = scmp.ne.s32.totalorder %s3062_s16, %s3945_s5  ;;  %p3953_p10 = scmp.lt.s32.totalorder %s3945_s5, %s3945_s5 }
 0x34b   : > { %v3936_v19 = vpop.eup %3935  ;;  %3643 = vmatprep.mubr.msk.f32.mxu1 %vm2004_vm4, %v2091_v18  ;;  %3647 = vmatpush3.msra.mxu0 %v2417_v21  ;;  %v2912_v18 = vld [vmem:[%s4134_s27 + $0x18] sm:$0xff]  ;;  %v2914_v21 = vld [vmem:[%s4134_s27 + $0x28] sm:$0xff] }
 0x34c   : > { %v2092_v20 = vmul.f32 %v3936_v19, %v3920_v59  ;;  %3656 = vmatprep.subr.mxu0 %v2419_v46  ;;  %v3860_v19 = vpack.c.bf16 %v2912_v18, %v2911_v17  ;;  %p3947_p7 = pnand %p3946_p6, %p3892_p5  ;;  %p3954_p11 = por %p3953_p10, %p3952_p9 }
 0x34e   : > { %3644 = vmatmul.mubr.msk.f32.vlgmr.msra.gmra.mrb[14].mxu1 %vm2004_vm4, %v2092_v20  ;;  %v2913_v20 = vld [vmem:[%s4134_s27 + $0x20] sm:$0xff]  ;;  %p3948_p8 = pneg %p3947_p7 }
 0x34f   : > { %3652 = vmatpush3.msra.mxu1 %v2418_v22  ;;  %v3864_v22 = vpack.c.bf16 %v2914_v21, %v2913_v20 }
 0x350   : > { %3661 = vmatprep.subr.mxu1 %v2420_v23  ;;  %p3955_p12 = pnand %p3954_p11, %p3948_p8 }
 0x415   : > { %v3624_v24 = vpop.f32.mrb[18].mxu0 }
 0x416   : > { %v2165_v26 = vpop.f32.mrb[19].mxu0 }
 0x417   : > { %3648 = vmatprep.mubr.msk.f32.mxu0 %vm1647_vm2, %v2165_v26  ;;  %v2917_v26 = vld [vmem:[%s4134_s27 + $0x40] sm:$0xff] }
 0x418   : > { %3649 = vmatmul.mubr.msk.f32.vlgmr.msra.gmra.mrb[24].mxu0 %vm1647_vm2, %v3624_v24 }
 0x419   : > { %v3631_v27 = vpop.f32.mrb[20].mxu0  ;;  %3657 = vmatpush3.msra.mxu0 %v2419_v46  ;;  %v2915_v46 = vld [vmem:[%s4134_s27 + $0x30] sm:$0xff] }
 0x41a   : > { %v2246_v28 = vpop.f32.mrb[21].mxu0  ;;  %3849 = vmatprep.subr.bf16.mxu0 %v3848_v10 }
 0x41b   : > { %3653 = vmatprep.mubr.msk.f32.mxu1 %vm1647_vm2, %v2246_v28 }
 0x41c   : > { %3654 = vmatmul.mubr.msk.f32.vlgmr.msra.gmra.mrb[16].mxu1 %vm1647_vm2, %v3631_v27  ;;  %v2918_v27 = vld [vmem:[%s4134_s27 + $0x48] sm:$0xff] }
 0x41d   : > { %v3638_v29 = vpop.f32.mrb[22].mxu0  ;;  %3662 = vmatpush3.msra.mxu1 %v2420_v23  ;;  %v2916_v23 = vld [vmem:[%s4134_s27 + $0x38] sm:$0xff]  ;;  %v3872_v28 = vpack.c.bf16 %v2918_v27, %v2917_v26  ;;  %v3307_v27 = vld [vmem:[%s662_s17] ss:$0 sm:$0xff] }
 0x41e   : > { %v2327_v30 = vpop.f32.mrb[23].mxu0  ;;  %3857 = vmatprep.subr.bf16.mxu1 %v3856_v34  ;;  %v3868_v24 = vpack.c.bf16 %v2916_v23, %v2915_v46 }
 0x41f   : > { %3658 = vmatprep.mubr.msk.f32.mxu0 %vm1647_vm2, %v2327_v30  ;;  %v2920_v30 = vld [vmem:[%s4134_s27 + $0x58] sm:$0xff] }
 0x420   : > { %3659 = vmatmul.mubr.msk.f32.vlgmr.msra.gmra.mrb[26].mxu0 %vm1647_vm2, %v3638_v29  ;;  %v2919_v29 = vld [vmem:[%s4134_s27 + $0x50] sm:$0xff] }
 0x421   : > { %v3645_v31 = vpop.f32.mrb[14].mxu1  ;;  %3851 = vmatpush3.bf16.msra.mxu0 %v3848_v10 }
 0x422   : > { %v2408_v32 = vpop.f32.mrb[15].mxu1  ;;  %3853 = vmatprep.subr.bf16.mxu0 %v3852_v14 }
 0x423   : > { %3663 = vmatprep.mubr.msk.f32.mxu1 %vm1647_vm2, %v2408_v32  ;;  %v2921_v32 = vld [vmem:[%s4134_s27 + $0x60] sm:$0xff] }
 0x424   : > { %3664 = vmatmul.mubr.msk.f32.vlgmr.msra.gmra.mrb[18].mxu1 %vm1647_vm2, %v3645_v31  ;;  %v3876_v31 = vpack.c.bf16 %v2920_v30, %v2919_v29 }
 0x425   : > { %3855 = vmatpush3.bf16.msra.mxu0 %v3852_v14  ;;  %3859 = vmatpush3.bf16.msra.mxu1 %v3856_v34 }
 0x426   : > { %3861 = vmatprep.subr.bf16.mxu1 %v3860_v19 }
 0x429   : > { %3863 = vmatpush3.bf16.msra.mxu1 %v3860_v19 }
 0x42a   : > { %3865 = vmatprep.subr.bf16.mxu1 %v3864_v22 }
 0x42d   : > { %3867 = vmatpush3.bf16.msra.mxu1 %v3864_v22 }
 0x42e   : > { %3869 = vmatprep.subr.bf16.mxu1 %v3868_v24 }
 0x431   : > { %3871 = vmatpush3.bf16.msra.mxu1 %v3868_v24 }
 0x432   : > { %3873 = vmatprep.subr.bf16.mxu1 %v3872_v28 }
 0x435   : > { %3875 = vmatpush3.bf16.msra.mxu1 %v3872_v28 }
 0x436   : > { %3877 = vmatprep.subr.bf16.mxu1 %v3876_v31 }
 0x439   : > { %3879 = vmatpush3.bf16.msra.mxu1 %v3876_v31 }
 0x4eb   : > { %v3650_v33 = vpop.f32.mrb[24].mxu0 }
 0x4ec   : > { %v2493_v35 = vpop.f32.mrb[25].mxu0  ;;  %v2752_v37 = vsel %vm706_vm1, %v3650_v33, 0.0  ;;  %v2922_v33 = vld [vmem:[%s4134_s27 + $0x68] sm:$0xff] }
 0x4ed   : > { %v2745_v40 = vsel %vm706_vm1, %v2493_v35, 0.0  ;;  %v3880_v35 = vpack.c.bf16 %v2922_v33, %v2921_v32 }
 0x4ef   : > { %v3655_v36 = vpop.f32.mrb[16].mxu1  ;;  %3881 = vmatprep.subr.bf16.mxu1 %v3880_v35 }
 0x4f0   : > { %v2753_v38 = vsel %vm706_vm1, %v3655_v36, 0.0  ;;  %v2574_v39 = vpop.f32.mrb[17].mxu1  ;;  %3883 = vmatpush3.bf16.msra.mxu1 %v3880_v35 }
 0x4f1   : > { %v2754_v41 = vadd.f32 %v2753_v38, %v2752_v37  ;;  %v2746_v42 = vsel %vm706_vm1, %v2574_v39, 0.0 }
 0x4f2   : > { %v2747_v43 = vadd.f32 %v2746_v42, %v2745_v40 }
 0x4f3   : > { %v3660_v44 = vpop.f32.mrb[26].mxu0 }
 0x4f4   : > { %v2755_v45 = vsel %vm706_vm1, %v3660_v44, 0.0  ;;  %v2655_v47 = vpop.f32.mrb[27].mxu0 }
 0x4f5   : > { %v2756_v48 = vadd.f32 %v2755_v45, %v2754_v41  ;;  %v2748_v49 = vsel %vm706_vm1, %v2655_v47, 0.0 }
 0x4f6   : > { %v2749_v50 = vadd.f32 %v2748_v49, %v2747_v43  ;;  %v3300_v43 = vld [vmem:[%s4485_s22] ss:$0 sm:$0xff] }
 0x4f7   : > { %v3665_v51 = vpop.f32.mrb[18].mxu1  ;;  %v3301_v49 = vld [vmem:[%s656_s28] ss:$0 sm:$0xff] }
 0x4f8   : > { %v2757_v52 = vsel %vm706_vm1, %v3665_v51, 0.0  ;;  %v2736_v54 = vpop.f32.mrb[19].mxu1 }
 0x4f9   : > { %v2758_v55 = vadd.f32 %v2757_v52, %v2756_v48  ;;  %v2750_v56 = vsel %vm706_vm1, %v2736_v54, 0.0  ;;  %v2924_v54 = vld [vmem:[%s4134_s27 + $0x78] sm:$0xff] }
 0x4fa   : > { %v2751_v57 = vadd.f32 %v2750_v56, %v2749_v50  ;;  %v3302_v56 = vld [vmem:[%s670_s24] ss:$0 sm:$0xff] }
 0x4fb   : > { %v2767_v58 = vadd.f32 %v3299_v53, %v2758_v55 }
 0x4fc   : > { %v2766_v59 = vadd.f32 %v3299_v53, %v2751_v57  ;;  %v2923_v53 = vld [vmem:[%s4134_s27 + $0x70] sm:$0xff]  ;;  %s4486_s27 = scalar_lea.vmem %s4449_s9, %s4078_s20 }
 0x4fd   : > { %v2769_v60 = vadd.f32 %v2767_v58, %v4169_v25  ;;  %v3884_v55 = vpack.c.bf16 %v2924_v54, %v2923_v53  ;;  %v3306_v46 = vld [vmem:[%s4486_s27] ss:$0 sm:$0xff] }
 0x4fe   : > { %v2768_v61 = vadd.f32 %v2766_v59, %v4155_v13 }
 0x4ff   : > { %v2773_v62 = vsel %vm706_vm1, %v2769_v60, 0.0  ;;  %3885 = vmatprep.subr.bf16.mxu1 %v3884_v55 }
 0x500   : > { %2774 = vadd.xlane.f32.xlu1 %v2773_v62  ;;  %v2770_v63 = vsel %vm706_vm1, %v2768_v61, 0.0  ;;  %3887 = vmatpush3.bf16.msra.mxu1 %v3884_v55 }
 0x501   : > { %2771 = vadd.xlane.f32.xlu0 %v2770_v63  ;;  %v3305_v63 = vld [vmem:[%s678_s4] ss:$0 sm:$0xff] }
 0x58d   : > { %v2775_v0 = vpop.xlane.xlu1 %2774 }
 0x58e   : > { %v2778_v1 = vmul.f32 0.03125, %v2775_v0  ;;  %v2772_v2 = vpop.xlane.xlu0 %2771 }
 0x58f   : > { %v2777_v3 = vmul.f32 0.03125, %v2772_v2 }
 0x590   : > { %v4344_v4 = vsub.f32 %v2769_v60, %v2778_v1 }
 0x591   : > { %v4346_v5 = vsub.f32 %v2768_v61, %v2777_v3 }
 0x592   : > { %v2782_v13 = vmul.f32 %v4344_v4, %v4344_v4 }
 0x593   : > { %v2781_v25 = vmul.f32 %v4346_v5, %v4346_v5 }
 0x594   : > { %v2786_v6 = vsel %vm706_vm1, %v2782_v13, 0.0 }
 0x595   : > { %2787 = vadd.xlane.f32.xlu1 %v2786_v6  ;;  %v2783_v7 = vsel %vm706_vm1, %v2781_v25, 0.0 }
 0x596   : > { %2784 = vadd.xlane.f32.xlu0 %v2783_v7 }
 0x622   : > { %v2788_v36 = vpop.xlane.xlu1 %2787 }
 0x623   : > { %v2790_v37 = vmul.f32 0.03125, %v2788_v36  ;;  %v2785_v38 = vpop.xlane.xlu0 %2784 }
 0x624   : > { %v2789_v39 = vmul.f32 0.03125, %v2785_v38 }
 0x625   : > { %v2792_v40 = vadd.f32 1e-05, %v2790_v37 }
 0x626   : > { %v2791_v41 = vadd.f32 1e-05, %v2789_v39 }
 0x627   : > { %3937 = vrsqrt.f32 %v2792_v40 }
 0x628   : > { %3939 = vrsqrt.f32 %v2791_v41 }
 0x631   : > { %v3938_v42 = vpop.eup %3937 }
 0x632   : > { %v3940_v44 = vpop.eup %3939  ;;  %v2796_v45 = vmul.f32 %v3938_v42, %v4344_v4 }
 0x633   : > { %v2795_v47 = vmul.f32 %v3940_v44, %v4346_v5 }
 0x634   : > { %v2805_v48 = vmul.f32 %v3300_v43, %v2796_v45 }
 0x635   : > { %v2804_v50 = vmul.f32 %v3300_v43, %v2795_v47 }
 0x636   : > { %v2814_v52 = vadd.f32 %v3301_v49, %v2805_v48 }
 0x637   : > { %v2813_v51 = vadd.f32 %v3301_v49, %v2804_v50 }
 0x639   : > { %3674 = vmatprep.mubr.msk.f32.mxu0 %vm706_vm1, %v2813_v51 }
 0x63a   : > { %3675 = vmatmul.mubr.msk.f32.vlgmr.msra.gmra.mrb[28].mxu0 %vm706_vm1, %v2814_v52 }
 0x70d   : > { %v3676_v57 = vpop.f32.mrb[28].mxu0 }
 0x70e   : > { %v2904_v58 = vadd.f32 %v3676_v57, %v3302_v56  ;;  %v2898_v59 = vpop.f32.mrb[29].mxu0 }
 0x70f   : > { %v2899_v60 = vadd.f32 %v3302_v56, %v2898_v59 }
 0x710   : > { %v2908_v62 = vmax.f32 %v2904_v58, 0.0 }
 0x711   : > { %v2907_v61 = vmax.f32 %v2899_v60, 0.0 }
 0x713   : > { %3709 = vmatprep.mubr.f32.mxu1 %v2907_v61 }
 0x714   : > { %3710 = vmatmul.mubr.f32.vlgmr.msra.gmra.mrb[20].mxu1 %v2908_v62 }
 0x7e7   : > { %v3711_v0 = vpop.f32.mrb[20].mxu1 }
 0x7e8   : > { %v3004_v1 = vadd.f32 %v3711_v0, %v3305_v63  ;;  %v2998_v2 = vpop.f32.mrb[21].mxu1 }
 0x7e9   : > { %v2999_v3 = vadd.f32 %v3305_v63, %v2998_v2 }
 0x7ea   : > { %v3008_v4 = vadd.f32 %v3004_v1, %v2814_v52 }
 0x7eb   : > { %v3007_v5 = vadd.f32 %v2999_v3, %v2813_v51 }
 0x7ec   : > { %v3012_v13 = vsel %vm706_vm1, %v3008_v4, 0.0 }
 0x7ed   : > { %3013 = vadd.xlane.f32.xlu1 %v3012_v13  ;;  %v3009_v25 = vsel %vm706_vm1, %v3007_v5, 0.0 }
 0x7ee   : > { %3010 = vadd.xlane.f32.xlu0 %v3009_v25 }
 0x87a   : > { %v3014_v6 = vpop.xlane.xlu1 %3013 }
 0x87b   : > { %v3016_v7 = vmul.f32 0.03125, %v3014_v6  ;;  %v3011_v8 = vpop.xlane.xlu0 %3010 }
 0x87c   : > { %v3015_v9 = vmul.f32 0.03125, %v3011_v8 }
 0x87d   : > { %v3018_v10 = vsub.f32 %v3008_v4, %v3016_v7 }
 0x87e   : > { %v3017_v11 = vsub.f32 %v3007_v5, %v3015_v9 }
 0x87f   : > { %v3020_v12 = vmul.f32 %v3018_v10, %v3018_v10 }
 0x880   : > { %v3019_v14 = vmul.f32 %v3017_v11, %v3017_v11 }
 0x881   : > { %v3024_v15 = vsel %vm706_vm1, %v3020_v12, 0.0 }
 0x882   : > { %3025 = vadd.xlane.f32.xlu1 %v3024_v15  ;;  %v3021_v16 = vsel %vm706_vm1, %v3019_v14, 0.0 }
 0x883   : > { %3022 = vadd.xlane.f32.xlu0 %v3021_v16 }
 0x90f   : > { %v3026_v17 = vpop.xlane.xlu1 %3025 }
 0x910   : > { %v3028_v34 = vmul.f32 0.03125, %v3026_v17  ;;  %v3023_v18 = vpop.xlane.xlu0 %3022 }
 0x911   : > { %v3027_v19 = vmul.f32 0.03125, %v3023_v18 }
 0x912   : > { %v3030_v20 = vadd.f32 1e-05, %v3028_v34 }
 0x913   : > { %v3029_v21 = vadd.f32 1e-05, %v3027_v19 }
 0x914   : > { %3941 = vrsqrt.f32 %v3030_v20 }
 0x915   : > { %3943 = vrsqrt.f32 %v3029_v21 }
 0x91e   : > { %v3942_v22 = vpop.eup %3941 }
 0x91f   : > { %v3944_v23 = vpop.eup %3943  ;;  %v3034_v24 = vmul.f32 %v3942_v22, %v3018_v10 }
 0x920   : > { %v3033_v26 = vmul.f32 %v3944_v23, %v3017_v11 }
 0x921   : > { %v3043_v28 = vmul.f32 %v3306_v46, %v3034_v24 }
 0x922   : > { %v3042_v29 = vmul.f32 %v3306_v46, %v3033_v26 }
 0x923   : > { %v3052_v30 = vadd.f32 %v3307_v27, %v3043_v28 }
 0x924   : > { %v3051_v31 = vadd.f32 %v3307_v27, %v3042_v29 }
 0x925   : > { %3054 = vst.msk [vmem:[#allocation2 + $0x8] sm:$0xff] %vm706_vm1, %v3052_v30 }
 0x926   : > { %3053 = vst.msk [vmem:[#allocation2] sm:$0xff] %vm706_vm1, %v3051_v31 }
 0x927   : > { %3958 = shalt.err (!%p3955_p12)
}
 0x928   : > { %s4487_s23 = sld [smem:[#allocation15_spill]] }
 0x92e   : > { %s3959_s0 = scalar_lea.hbm %s4487_s23, 256 }
 0x92f   : > { %p3960_p13 = scmp.ne.s32.totalorder %s4487_s23, %s3959_s0  ;;  %p3965_p2 = scmp.lt.u32.totalorder %s3959_s0, %s4487_s23 }
 0x931   : > { %p3961_p0 = pnand %p3960_p13, %p3892_p5 }
 0x933   : > { %p3962_p1 = pneg %p3961_p0 }
 0x935   : > { %p3967_p3 = pnand %p3965_p2, %p3962_p1 }
 0x937   : > { %3970 = shalt.err (!%p3967_p3)
}
 0x938   : > { %s3984_s25 = smov 128   ;;  %s3985_s28 = smov 8  }
 0x939   : > { %3889 = dma.vmem_to_hbm [thread:$0]  (%p3892_p5), %s3062_s16, 256, %s4487_s23, [#allocation3], %s3984_s25, %s3984_s25, %s3985_s28  }
 0x93a   : > { %3976 = dma.done.wait (%p3892_p5), [#allocation3], 256  }
 0x93b   : > { %3978 = vsyncadd (%p3892_p5), [#allocation3], 4294967040 }
 0x93c PF: > { %s4488_s24 = sld [smem:[#allocation5_spill]] }
 0x942   : > { %s26_s18 = sadd.s32 1, %s4488_s24  }
 0x943   : > { %p23_p4 = scmp.ge.s32.totalorder %s26_s18, 4  }
 0x945   :  { %25 = sbr.rel (!%p23_p4) target bundleno = 9 (0x9), region = 147 }
 0x94c   :  { %3077 = vsyncpa [#allocation3], 1 }
 0x94d   :  { %3079 = vsyncpa [#allocation3 + $0x1], 1 }

</bundles_post_ra>
